<compile_context>
chip_gen: v7x
topology: tpu7x:2x2x1
jax: 0.10.0
libtpu: 0.0.40
codegen_flags: <defaults>
</compile_context>

<pallas_src>
import jax
import jax.numpy as jnp
from jax import lax
from jax.experimental import pallas as pl
from jax.experimental.pallas import tpu as pltpu


# Batch-tile cap.  Per-step VMEM at 16384 (f32):
#   x block (TILE_B, 7) lane-padded to 128 -> 8 MiB, double-buffered  -> 16 MiB
#   out block (1, TILE_B) sublane-padded to 8 -> 0.5 MiB, double-buffered -> 1 MiB
#   h1 (32, TILE_B) + h2 (16, TILE_B) + logits temporaries            -> ~3.5 MiB
# Total ~20.5 MiB, inside the 32 MiB limit we request (physical VMEM: 128/128/64 MiB).
MAX_TILE_B = 16384


def _round_up(n, m):
    return ((n + m - 1) // m) * m


def _mlp_kernel(x_ref, w1_ref, b1_ref, w2_ref, b2_ref, w3_ref, b3_ref, o_ref):
    x = x_ref[...]                                                      # (TB, 7) batch-major
    # Layer 1: Linear(7 -> 32) + ReLU.  Contract the feature axis of both operands
    # (w1t[m,k] * x[b,k] -> h1[m,b]) so the result is feature-major with batch on lanes.
    # (Dropout(0.2) is identity at inference.)
    h1 = lax.dot_general(w1_ref[...], x,
                         dimension_numbers=(((1,), (1,)), ((), ())),
                         preferred_element_type=jnp.float32)            # (32, TB)
    h1 = jnp.maximum(h1 + b1_ref[...], 0.0)
    # Layer 2: Linear(32 -> 16) + ReLU
    h2 = jnp.dot(w2_ref[...], h1, preferred_element_type=jnp.float32)   # (16, TB)
    h2 = jnp.maximum(h2 + b2_ref[...], 0.0)
    # Layer 3: Linear(16 -> 1) + Sigmoid
    logits = jnp.dot(w3_ref[...], h2, preferred_element_type=jnp.float32) + b3_ref[...]
    o_ref[...] = jax.nn.sigmoid(logits)                                  # (1, TB) lane-dense


def _choose_tile_b(B, max_tile_b):
    if B <= 128:
        # Single full-extent block (block dims == array dims), always legal.
        return B
    # Split into >= 2 tiles whenever possible so both v7x TensorCores get work.
    return min(max_tile_b, _round_up(pl.cdiv(B, 2), 128))


def session_classifier_forward(x, params, max_tile_b=MAX_TILE_B):
    """x: (B, 7) float32.  Returns (B, 1) float32 probabilities (eval-mode forward)."""
    w1, b1, w2, b2, w3, b3 = params
    B, F = x.shape
    assert F == 7, x.shape

    # Weights in feature-major form: (out, in); biases as (out, 1) columns.  These are tiny.
    w1t, w2t, w3t = w1.T, w2.T, w3.T                       # (32,7), (16,32), (1,16)
    b1t, b2t, b3t = b1.reshape(-1, 1), b2.reshape(-1, 1), b3.reshape(-1, 1)

    tile_b = _choose_tile_b(B, max_tile_b)
    num_tiles = pl.cdiv(B, tile_b)

    # Per-step VMEM footprint (x lane-pads 7->128; out sublane-pads 1->8; + activations).
    vmem_bytes = 2 * tile_b * 128 * 4 + 2 * 8 * tile_b * 4 + (32 + 16 + 8) * tile_b * 4
    vmem_limit = min(max(vmem_bytes + (4 << 20), 16 << 20), 40 << 20)

    # Weights/biases: full block, constant block index -> DMA'd once, VMEM-resident.
    const = lambda a: pl.BlockSpec(a.shape, lambda i: (0, 0))

    out = pl.pallas_call(
        _mlp_kernel,
        out_shape=jax.ShapeDtypeStruct((1, B), jnp.float32),
        grid=(num_tiles,),
        in_specs=[
            # Batch-tiled input in its natural (B, 7) layout; ragged last tile handled by
            # Pallas (only batch rows, never the contraction dim, are padded).
            pl.BlockSpec((tile_b, 7), lambda i: (i, 0)),
            const(w1t), const(b1t),
            const(w2t), const(b2t),
            const(w3t), const(b3t),
        ],
        out_specs=pl.BlockSpec((1, tile_b), lambda i: (0, i)),
        compiler_params=pltpu.CompilerParams(
            dimension_semantics=("parallel",),             # shard batch tiles across v7x's 2 TCs
            vmem_limit_bytes=int(vmem_limit),
        ),
        cost_estimate=pl.CostEstimate(
            flops=1504 * B,            # 2*(7*32 + 32*16 + 16*1) per sample
            transcendentals=B,         # sigmoid
            bytes_accessed=32 * B,     # 28 B read + 4 B write per sample
        ),
    )(x, w1t, b1t, w2t, b2t, w3t, b3t)

    return out[0].reshape(B, 1)


def init_params(key):
    """Deterministic init mimicking nn.Linear default (uniform +- 1/sqrt(fan_in)).

    Weights are stored (in_features, out_features); the wrapper transposes to
    the feature-major layout the kernel consumes."""
    def linear(k, fan_in, fan_out):
        kw, kb = jax.random.split(k)
        bound = 1.0 / jnp.sqrt(fan_in)
        w = jax.random.uniform(kw, (fan_in, fan_out), jnp.float32, -bound, bound)
        b = jax.random.uniform(kb, (1, fan_out), jnp.float32, -bound, bound)
        return w, b

    k1, k2, k3 = jax.random.split(key, 3)
    w1, b1 = linear(k1, 7, 32)
    w2, b2 = linear(k2, 32, 16)
    w3, b3 = linear(k3, 16, 1)
    return (w1, b1, w2, b2, w3, b3)


def _reference(x, params):
    w1, b1, w2, b2, w3, b3 = params
    h1 = jnp.maximum(x @ w1 + b1, 0.0)
    h2 = jnp.maximum(h1 @ w2 + b2, 0.0)
    return jax.nn.sigmoid(h2 @ w3 + b3)


if __name__ == "__main__":
    key = jax.random.PRNGKey(0)
    kx, kp = jax.random.split(key)

    B = 8
    x = jax.random.normal(kx, (B, 7), dtype=jnp.float32)
    params = init_params(kp)

    out = jax.block_until_ready(session_classifier_forward(x, params))
    ref = _reference(x, params)
    assert out.shape == (B, 1), out.shape
    assert jnp.allclose(out, ref, atol=1e-5, rtol=1e-5), (out, ref)

    # Exercise the multi-tile + ragged-last-tile path (300 = 256 + partial 44-row tile).
    B2 = 300
    x2 = jax.random.normal(jax.random.PRNGKey(1), (B2, 7), dtype=jnp.float32)
    out2 = jax.block_until_ready(session_classifier_forward(x2, params))
    assert out2.shape == (B2, 1), out2.shape
    assert jnp.allclose(out2, _reference(x2, params), atol=1e-5, rtol=1e-5)

    print("KERNEL_OK")
</pallas_src>

<mosaic_0001>
module attributes {stable_mosaic.version = 11 : i64} {
  func.func @_mlp_kernel(%arg0: i32, %arg1: memref<8x7xf32, #tpu.memory_space<vmem>>, %arg2: memref<32x7xf32, #tpu.memory_space<vmem>>, %arg3: memref<32x1xf32, #tpu.memory_space<vmem>>, %arg4: memref<16x32xf32, #tpu.memory_space<vmem>>, %arg5: memref<16x1xf32, #tpu.memory_space<vmem>>, %arg6: memref<1x16xf32, #tpu.memory_space<vmem>>, %arg7: memref<1x1xf32, #tpu.memory_space<vmem>>, %arg8: memref<1x8xf32, #tpu.memory_space<vmem>>) attributes {dimension_semantics = [#tpu.dimension_semantics<parallel>], iteration_bounds = array<i64: 1>, scalar_prefetch = 0 : i64, scratch_operands = 0 : i64, tpu.core_type = #tpu.core_type<tc>, window_params = [{transform_indices = @transform_0, window_bounds = array<i64: 8, 7>}, {pipeline_mode = #tpu.pipeline_mode<synchronous>, transform_indices = @transform_1, window_bounds = array<i64: 32, 7>}, {pipeline_mode = #tpu.pipeline_mode<synchronous>, transform_indices = @transform_2, window_bounds = array<i64: 32, 1>}, {pipeline_mode = #tpu.pipeline_mode<synchronous>, transform_indices = @transform_3, window_bounds = array<i64: 16, 32>}, {pipeline_mode = #tpu.pipeline_mode<synchronous>, transform_indices = @transform_4, window_bounds = array<i64: 16, 1>}, {pipeline_mode = #tpu.pipeline_mode<synchronous>, transform_indices = @transform_5, window_bounds = array<i64: 1, 16>}, {pipeline_mode = #tpu.pipeline_mode<synchronous>, transform_indices = @transform_6, window_bounds = array<i64: 1, 1>}, {transform_indices = @transform_7, window_bounds = array<i64: 1, 8>}]} {
    %c0 = arith.constant 0 : index
    %c0_0 = arith.constant 0 : index
    %0 = vector.load %arg1[%c0, %c0_0] : memref<8x7xf32, #tpu.memory_space<vmem>>, vector<8x7xf32>
    %c0_1 = arith.constant 0 : index
    %c0_2 = arith.constant 0 : index
    %1 = vector.load %arg2[%c0_1, %c0_2] : memref<32x7xf32, #tpu.memory_space<vmem>>, vector<32x7xf32>
    %cst = arith.constant dense<0.000000e+00> : vector<32x8xf32>
    %2 = tpu.matmul %1, %0, %cst {dimension_numbers = #tpu.dot_dimension_numbers<[1], [1], [0], [0], [0, 0, 1, 0], [], []>} : vector<32x7xf32>, vector<8x7xf32>, vector<32x8xf32> -> vector<32x8xf32>
    %c0_3 = arith.constant 0 : index
    %c0_4 = arith.constant 0 : index
    %3 = vector.load %arg3[%c0_3, %c0_4] : memref<32x1xf32, #tpu.memory_space<vmem>>, vector<32x1xf32>
    %4 = vector.broadcast %3 : vector<32x1xf32> to vector<32x8xf32>
    %5 = arith.addf %2, %4 : vector<32x8xf32>
    %cst_5 = arith.constant 0.000000e+00 : f32
    %6 = vector.broadcast %cst_5 : f32 to vector<32x8xf32>
    %7 = arith.maximumf %5, %6 : vector<32x8xf32>
    %c0_6 = arith.constant 0 : index
    %c0_7 = arith.constant 0 : index
    %8 = vector.load %arg4[%c0_6, %c0_7] : memref<16x32xf32, #tpu.memory_space<vmem>>, vector<16x32xf32>
    %cst_8 = arith.constant dense<0.000000e+00> : vector<16x8xf32>
    %9 = tpu.matmul %8, %7, %cst_8 {dimension_numbers = #tpu.dot_dimension_numbers<[1], [0], [0], [1], [0, 0, 1, 1], [], []>} : vector<16x32xf32>, vector<32x8xf32>, vector<16x8xf32> -> vector<16x8xf32>
    %c0_9 = arith.constant 0 : index
    %c0_10 = arith.constant 0 : index
    %10 = vector.load %arg5[%c0_9, %c0_10] : memref<16x1xf32, #tpu.memory_space<vmem>>, vector<16x1xf32>
    %11 = vector.broadcast %10 : vector<16x1xf32> to vector<16x8xf32>
    %12 = arith.addf %9, %11 : vector<16x8xf32>
    %cst_11 = arith.constant 0.000000e+00 : f32
    %13 = vector.broadcast %cst_11 : f32 to vector<16x8xf32>
    %14 = arith.maximumf %12, %13 : vector<16x8xf32>
    %c0_12 = arith.constant 0 : index
    %c0_13 = arith.constant 0 : index
    %15 = vector.load %arg6[%c0_12, %c0_13] : memref<1x16xf32, #tpu.memory_space<vmem>>, vector<1x16xf32>
    %cst_14 = arith.constant dense<0.000000e+00> : vector<1x8xf32>
    %16 = tpu.matmul %15, %14, %cst_14 {dimension_numbers = #tpu.dot_dimension_numbers<[1], [0], [0], [1], [0, 0, 1, 1], [], []>} : vector<1x16xf32>, vector<16x8xf32>, vector<1x8xf32> -> vector<1x8xf32>
    %c0_15 = arith.constant 0 : index
    %c0_16 = arith.constant 0 : index
    %17 = vector.load %arg7[%c0_15, %c0_16] : memref<1x1xf32, #tpu.memory_space<vmem>>, vector<1x1xf32>
    %18 = vector.broadcast %17 : vector<1x1xf32> to vector<1x8xf32>
    %19 = arith.addf %16, %18 : vector<1x8xf32>
    %20 = arith.negf %19 : vector<1x8xf32>
    %21 = math.exp %20 : vector<1x8xf32>
    %cst_17 = arith.constant 1.000000e+00 : f32
    %22 = vector.broadcast %cst_17 : f32 to vector<1x8xf32>
    %23 = arith.addf %22, %21 : vector<1x8xf32>
    %24 = arith.divf %22, %23 : vector<1x8xf32>
    %c0_18 = arith.constant 0 : index
    %c0_19 = arith.constant 0 : index
    %25 = vector.load %arg8[%c0_18, %c0_19] : memref<1x8xf32, #tpu.memory_space<vmem>>, vector<1x8xf32>
    tpu.vector_store %arg8[%c0_18, %c0_19], %24 {strides = array<i32>} : memref<1x8xf32, #tpu.memory_space<vmem>>, vector<1x8xf32>,
    return
  }
  func.func @transform_0(%arg0: i32) -> (i32, i32) {
    %c0_i32 = arith.constant 0 : i32
    %c0_i32_0 = arith.constant 0 : i32
    return %arg0, %c0_i32 : i32, i32
  }
  func.func @transform_1(%arg0: i32) -> (i32, i32) {
    %c0_i32 = arith.constant 0 : i32
    %c0_i32_0 = arith.constant 0 : i32
    %c0_i32_1 = arith.constant 0 : i32
    return %c0_i32, %c0_i32_0 : i32, i32
  }
  func.func @transform_2(%arg0: i32) -> (i32, i32) {
    %c0_i32 = arith.constant 0 : i32
    %c0_i32_0 = arith.constant 0 : i32
    %c0_i32_1 = arith.constant 0 : i32
    return %c0_i32, %c0_i32_0 : i32, i32
  }
  func.func @transform_3(%arg0: i32) -> (i32, i32) {
    %c0_i32 = arith.constant 0 : i32
    %c0_i32_0 = arith.constant 0 : i32
    %c0_i32_1 = arith.constant 0 : i32
    return %c0_i32, %c0_i32_0 : i32, i32
  }
  func.func @transform_4(%arg0: i32) -> (i32, i32) {
    %c0_i32 = arith.constant 0 : i32
    %c0_i32_0 = arith.constant 0 : i32
    %c0_i32_1 = arith.constant 0 : i32
    return %c0_i32, %c0_i32_0 : i32, i32
  }
  func.func @transform_5(%arg0: i32) -> (i32, i32) {
    %c0_i32 = arith.constant 0 : i32
    %c0_i32_0 = arith.constant 0 : i32
    %c0_i32_1 = arith.constant 0 : i32
    return %c0_i32, %c0_i32_0 : i32, i32
  }
  func.func @transform_6(%arg0: i32) -> (i32, i32) {
    %c0_i32 = arith.constant 0 : i32
    %c0_i32_0 = arith.constant 0 : i32
    %c0_i32_1 = arith.constant 0 : i32
    return %c0_i32, %c0_i32_0 : i32, i32
  }
  func.func @transform_7(%arg0: i32) -> (i32, i32) {
    %c0_i32 = arith.constant 0 : i32
    %c0_i32_0 = arith.constant 0 : i32
    return %c0_i32, %arg0 : i32, i32
  }
}

</mosaic_0001>

<bundles_post_ra>
// kernel: tpu_custom_call.1
= control target key start
LH: loop header
LB: loop body
LE: loop exit
PB: predicated region body
PF: predicated region fallthrough
CT: control target
= control target key end

     0   :  { %s573_s0 = inlined_call_operand.vmem [shape: f32[8,7], index: 0, kind: input, shape index: {}]   ;;  %s574_s1 = inlined_call_operand.vmem [shape: f32[32,7], index: 1, kind: input, shape index: {}]   ;;  %s575_s2 = inlined_call_operand.vmem [shape: f32[32,1], index: 2, kind: input, shape index: {}]   ;;  %s576_s3 = inlined_call_operand.vmem [shape: f32[16,32], index: 3, kind: input, shape index: {}]   ;;  %s577_s4 = inlined_call_operand.vmem [shape: f32[16,1], index: 4, kind: input, shape index: {}]   ;;  %s578_s5 = inlined_call_operand.vmem [shape: f32[1,16], index: 5, kind: input, shape index: {}]   ;;  %s579_s6 = inlined_call_operand.<no memory space> [shape: f32[1,1], index: 6, kind: input, shape index: {}]   ;;  %s580_s7 = inlined_call_operand.hbm [shape: f32[1,8], index: 7, kind: output, shape index: {}]  }
   0x1   :  { %v12_v0 = vstv %s579_s6 }
   0x2   :  { %13 = vst [vmem:[#allocation2] sm:$0x1] %v12_v0 }
   0x3   :  { %v29_v1 = vld [vmem:[%s573_s0] sm:$0xff]  ;;  %vm58_vm0 = vcmask 56320   ;;  %v31_v4 = vld [vmem:[%s574_s1 + $0x8] sm:$0xff]  ;;  %v463_v5 = vmov 0   ;;  %v36_v6 = vld [vmem:[%s575_s2 + $0x10] sm:$0xff] }
   0x4   :  { %v30_v2 = vld [vmem:[%s574_s1] sm:$0xff]  ;;  %391 = vmatprep.subr.msk.mxu0 %vm58_vm0, %v29_v1  ;;  %433 = vset.pattern.permute.xlu0 %v463_v5  ;;  %v32_v7 = vld [vmem:[%s574_s1 + $0x10] sm:$0xff]  ;;  %v35_v8 = vld [vmem:[%s575_s2 + $0x8] sm:$0xff] }
   0x5   :  { %393 = vmatprep.mubr.msk.f32.mxu0 %vm58_vm0, %v30_v2  ;;  %v34_v3 = vld [vmem:[%s575_s2] sm:$0xff]  ;;  %392 = vmatpush3.xpose.msk.msra.mxu0 %vm58_vm0, %v29_v1 }
   0x6   :  { %40 = vperm.xlu0 %433, %v34_v3   ;;  %434 = vset.pattern.permute.xlu1 %v463_v5 }
   0x7   :  { %50 = vperm.xlu1 %434, %v36_v6  }
   0x8   :  { %14 = vsyncpa [#allocation4], 0  ;;  %394 = vmatmul.mubr.msk.f32.vlgmr.msra.gmra.mrb[0].mxu0 %vm58_vm0, %v31_v4  ;;  %v37_v9 = vld [vmem:[%s575_s2 + $0x18] sm:$0xff]  ;;  %v165_v11 = vld [vmem:[%s577_s4] sm:$0xff]  ;;  %vm177_vm1 = vcmask 261120   ;;  %v464_v34 = vmov 0.0|0.0   ;;  %v268_v46 = vlaneseq }
   0x9   :  { %396 = vmatprep.mubr.msk.f32.mxu0 %vm58_vm0, %v32_v7  ;;  %v33_v10 = vld [vmem:[%s574_s1 + $0x18] sm:$0xff]  ;;  %v166_v12 = vld [vmem:[%s577_s4 + $0x8] sm:$0xff]  ;;  %v262_v13 = vld [vmem:[#allocation2] sm:$0x1]  ;;  %425 = vmatprep.subr.bf16.mxu0 %v464_v34  ;;  %vm465_vm2 = vmmov 0   ;;  %v466_v35 = vmov 0.0  }
   0xa   :  { %45 = vperm.xlu0 %433, %v35_v8   ;;  %v163_v14 = vld [vmem:[%s576_s3] sm:$0xff]  ;;  %v164_v33 = vld [vmem:[%s576_s3 + $0x8] sm:$0xff]  ;;  %vm272_vm3 = vcmask 130048   ;;  %v269_v47 = vshrl.u32 %v268_v46, 7  ;;  %s467_s3 = smov [#allocation3]   ;;  %vm352_vm4 = vcmask 57344  }
   0xb   :  { %55 = vperm.xlu1 %434, %v37_v9   ;;  %407 = vmatprep.mubr.msk.f32.mxu1 %vm177_vm1, %v163_v14  ;;  %v261_v45 = vld [vmem:[%s578_s5] sm:$0x1]  ;;  %s360_s26 = sshll.u32 %s467_s3, 4  ;;  %s361_s26 = int_to_ptr.vmem [resolvable:$true] %s360_s26 }
   0xc   :  { %397 = vmatmul.mubr.msk.f32.gmra.mrb[2].mxu0 %vm58_vm0, %v33_v10  ;;  %v270_v48 = vsub.s32 0, %v269_v47  ;;  %s439_s5 = scalar_lea.vmem %s361_s26, 16  ;;  %s443_s27 = scalar_lea.vmem %s361_s26, 32 }
   0xd   :  { %414 = vmatprep.mubr.msk.f32.mxu0 %vm465_vm2, %v466_v35  ;;  %p440_p0 = scmp.ne.s32.totalorder %s361_s26, %s439_s5  ;;  %p444_p1 = scmp.lt.s32.totalorder %s361_s26, %s361_s26 }
   0xe   :  { %169 = vperm.xlu0 %433, %v165_v11   ;;  %p445_p2 = scmp.lt.s32.totalorder %s443_s27, %s439_s5 }
   0xf   :  { %174 = vperm.xlu1 %434, %v166_v12  }
  0x10   :  { %p446_p3 = por %p445_p2, %p444_p1 }
  0x12   :  { %265 = vperm.xlu0 %433, %v262_v13   ;;  %p447_p4 = pnand %p446_p3, %p440_p0 }
  0x85   :  { %v41_v15 = vpop.permute.xlu0 %40 }
  0x86   :  { %v51_v16 = vpop.permute.xlu1 %50 }
  0x89   :  { %v46_v17 = vpop.permute.xlu0 %45 }
  0x8a   :  { %v56_v23 = vpop.permute.xlu1 %55 }
  0x8d   :  { %v170_v38 = vpop.permute.xlu0 %169 }
  0x8e   :  { %v175_v36 = vpop.permute.xlu1 %174 }
  0x91   :  { %v266_v49 = vpop.permute.xlu0 %265 }
  0x92   :  { %v271_v50 = vrot.slane %v266_v49, %v270_v48 }
  0xdb   :  { %v395_v18 = vpop.f32.mrb[0].mxu0 }
  0xdc   :  { %v146_v19 = vadd.f32 %v395_v18, %v46_v17  ;;  %v140_v20 = vpop.f32.mrb[1].mxu0 }
  0xdd   :  { %v141_v21 = vadd.f32 %v140_v20, %v41_v15 }
  0xde   :  { %v160_v22 = vmax.f32 %v146_v19, 0.0 }
  0xdf   :  { %v159_v24 = vmax.f32 %v141_v21, 0.0  ;;  %v398_v25 = vpop.f32.mrb[2].mxu0 }
  0xe0   :  { %v156_v26 = vadd.f32 %v398_v25, %v56_v23  ;;  %v150_v27 = vpop.f32.mrb[3].mxu0 }
  0xe1   :  { %v151_v28 = vadd.f32 %v150_v27, %v51_v16  ;;  %v417_v29 = vpack.c.bf16 %v160_v22, %v159_v24 }
  0xe2   :  { %v162_v30 = vmax.f32 %v156_v26, 0.0 }
  0xe3   :  { %v161_v31 = vmax.f32 %v151_v28, 0.0  ;;  %418 = vmatprep.subr.bf16.mxu1 %v417_v29 }
  0xe4   :  { %420 = vmatpush3.bf16.msra.mxu1 %v417_v29 }
  0xe5   :  { %v421_v32 = vpack.c.bf16 %v162_v30, %v161_v31 }
  0xe7   :  { %422 = vmatprep.subr.bf16.mxu1 %v421_v32 }
  0xe8   :  { %424 = vmatpush3.bf16.msra.mxu1 %v421_v32 }
  0xeb   :  { %408 = vmatmul.mubr.msk.f32.vlgmr.msra.gmra.mrb[0].mxu1 %vm177_vm1, %v164_v33 }
 0x1be   :  { %v409_v37 = vpop.f32.mrb[0].mxu1 }
 0x1bf   :  { %v256_v39 = vadd.f32 %v409_v37, %v175_v36  ;;  %v250_v40 = vpop.f32.mrb[1].mxu1 }
 0x1c0   :  { %v251_v41 = vadd.f32 %v250_v40, %v170_v38 }
 0x1c1   :  { %v260_v42 = vmax.f32 %v256_v39, 0.0 }
 0x1c2   :  { %v259_v43 = vmax.f32 %v251_v41, 0.0 }
 0x1c4   :  { %v426_v44 = vpack.c.bf16 %v260_v42, %v259_v43 }
 0x1c6   :  { %427 = vmatpush3.bf16.msra.mxu0 %v426_v44 }
 0x1c9   :  { %415 = vmatmul.mubr.msk.f32.vlgmr.msra.gmra.mrb[4].mxu0 %vm272_vm3, %v261_v45 }
 0x29c   :  { %v342_v51 = vpop.f32.mrb[4].mxu0 }
 0x29d   :  { %v343_v52 = vadd.f32 %v342_v51, %v271_v50  ;;  %v416_v53 = vpop.f32.mrb[5].mxu0 }
 0x29f   :  { %v376_v54 = vmul.f32 -1.442695, %v343_v52 }
 0x2a1   :  { %435 = vpow2.f32 %v376_v54 }
 0x2ab   :  { %v436_v55 = vpop.eup %435 }
 0x2ac   :  { %v349_v56 = vadd.f32 1.0, %v436_v55 }
 0x2ae   :  { %437 = vrcp.f32 %v349_v56 }
 0x2b8   :  { %v438_v57 = vpop.eup %437 }
 0x2b9   :  { %353 = vst.msk [vmem:[#allocation3] sm:$0x1] %vm352_vm4, %v438_v57 }
 0x2ba   :  { %450 = shalt.err (!%p447_p4)
}
 0x2bb   :  { %s451_s30 = scalar_lea.hbm %s580_s7, 16 }
 0x2bc   :  { %p452_p5 = scmp.ne.s32.totalorder %s580_s7, %s451_s30  ;;  %p455_p6 = scmp.lt.u32.totalorder %s451_s30, %s580_s7 }
 0x2be   :  { %p457_p7 = pnand %p455_p6, %p452_p5 }
 0x2c0   :  { %460 = shalt.err (!%p457_p7)
}
 0x2c1   :  { %363 = dma.vmem_to_hbm [thread:$0]  %s361_s26, 16, %s580_s7, [#allocation4]  }
 0x2c2   :  { %461 = dma.done.wait [#allocation4], 16  }
 0x2c3   :  { %462 = vsyncadd [#allocation4], 4294967280 }
 0x2c4   :  { %367 = vsyncpa [#allocation4], 1 }

</bundles_post_ra>
